<compile_context>
chip_gen: v7x
topology: tpu7x:2x2x1
jax: 0.10.0
libtpu: 0.0.40
codegen_flags: <defaults>
</compile_context>

<pallas_src>
import functools

import jax
import jax.numpy as jnp
from jax.experimental import pallas as pl
from jax.experimental.pallas import tpu as pltpu

_MiB = 1024 * 1024


def _cdiv(a, b):
    return (a + b - 1) // b


def _round_up(x, m):
    return _cdiv(x, m) * m


def _vmem_budget():
    """Generation-aware VMEM budgeting.

    Returns (tile_budget_bytes, vmem_limit_bytes, prefer_many_tiles).
      - 128-MiB parts (v5e/v6e, single TensorCore): generous budget, keep tn large,
        no need to manufacture extra grid tiles.
      - 64-MiB-per-core parts (v7x, 2 TCs) or unknown hardware: conservative budget,
        keep >= 8 grid tiles so both TensorCores get work.
    """
    kind = ""
    try:
        kind = str(jax.devices()[0].device_kind).lower()
    except Exception:
        pass
    cap = None
    try:
        info = pltpu.get_tpu_info()
        cap = int(getattr(info, "vmem_capacity_bytes", 0) or 0) or None
    except Exception:
        cap = None

    big_vmem = (cap is not None and cap >= 96 * _MiB) and ("7" not in kind)
    if big_vmem:
        return 56 * _MiB, 96 * _MiB, False
    return 26 * _MiB, 44 * _MiB, True


def _pick_tiles(K, Cout, N, B, budget_bytes, prefer_many_tiles):
    """Pick (tn, tk): lane tile over N = OH*OW and reduction tile over K = Cin*ks*ks.

    Keeps the output lane tile as wide as possible (up to 1024) and tiles the K
    (reduction) axis instead of shrinking tn when the working set exceeds the
    VMEM budget.
    """
    def need(tk, tn):
        return (2 * tk * tn * 2          # x_cols block, bf16, double buffered
                + 2 * Cout * tk * 2      # weight block, bf16, double buffered
                + 2 * Cout * tn * 2      # output block, bf16, double buffered
                + Cout * tn * 4          # f32 accumulator scratch
                + 2 * Cout * 4)          # bias

    tn = 1024
    # Don't over-pad tiny spatial extents.
    while tn > 128 and tn // 2 >= _round_up(N, 128):
        tn //= 2
    # If N is lane-aligned, prefer a tile that divides it exactly: no output
    # padding and no post-kernel slice copy.  Only accept if it keeps tn >= 512.
    if N % 128 == 0 and N % tn != 0:
        t = tn
        while t > 128 and N % t != 0:
            t //= 2
        if N % t == 0 and t >= 512:
            tn = t
    # On multi-TensorCore parts keep >= 8 grid tiles so both cores get work.
    if prefer_many_tiles:
        while tn > 128 and B * _cdiv(N, tn) < 8:
            tn //= 2

    while True:
        if need(K, tn) <= budget_bytes:
            return tn, K                     # single K block, no K padding needed
        # Tile the reduction axis (multiples of 128) before narrowing tn.
        tk = _round_up(K, 128)
        while tk > 128 and need(tk, tn) > budget_bytes:
            tk = _round_up(tk // 2, 128)
        if need(tk, tn) <= budget_bytes or tn == 128:
            return tn, tk
        tn //= 2


def _conv_matmul_relu_kernel(x_ref, w_ref, b_ref, o_ref, acc_ref):
    """(Cout, tk) @ (tk, tn) MXU step, f32 accumulation; bias+ReLU on last K step."""
    k = pl.program_id(2)

    @pl.when(k == 0)
    def _():
        acc_ref[...] = jnp.zeros_like(acc_ref)

    acc_ref[...] += jnp.dot(w_ref[...], x_ref[...],
                            preferred_element_type=jnp.float32)

    @pl.when(k == pl.num_programs(2) - 1)
    def _():
        # f32 epilogue (v5e has no bf16 VALU); cast only at the store (bf16 out).
        acc = acc_ref[...] + b_ref[...]
        o_ref[...] = jnp.maximum(acc, 0.0).astype(o_ref.dtype)


def conv2d_stride2_relu(x_nchw, w_torch, bias, ks, tiles=None):
    """One encoder stage: Conv2d(stride=2, padding=ks//2) + ReLU, no norm.

    NCHW in / NCHW out.  Output is bf16 (next stage consumes bf16 anyway).
    """
    B, Cin, H, W = x_nchw.shape
    Cout = w_torch.shape[0]
    pad = ks // 2
    stride = 2
    OH = (H + 2 * pad - ks) // stride + 1
    OW = (W + 2 * pad - ks) // stride + 1
    N = OH * OW
    K = Cin * ks * ks

    budget, vmem_limit, prefer_many_tiles = _vmem_budget()
    if tiles is None:
        tn, tk = _pick_tiles(K, Cout, N, B, budget, prefer_many_tiles)
    else:
        tn, tk = tiles
    n_pad = _round_up(N, tn)
    k_pad = _round_up(K, tk)
    nk = k_pad // tk

    # --- layout glue (no FLOPs): bf16 cast FIRST, then NCHW im2col -> (B, K, N) ---
    # K index = ci*ks*ks + kh*ks + kw, matching w_torch.reshape(Cout, K).
    x_bf16 = x_nchw.astype(jnp.bfloat16)
    x_p = jnp.pad(x_bf16, ((0, 0), (0, 0), (pad, pad), (pad, pad)))
    cols = []
    for kh in range(ks):
        for kw in range(ks):
            cols.append(
                x_p[:, :, kh:kh + stride * OH:stride, kw:kw + stride * OW:stride])
    x_cols = jnp.stack(cols, axis=2).reshape(B, K, N)
    x_cols = jnp.pad(x_cols, ((0, 0), (0, k_pad - K), (0, n_pad - N)))

    # torch weight (Cout, Cin, kh, kw) -> (Cout, K), same K ordering as x_cols.
    w_mat = w_torch.reshape(Cout, K).astype(jnp.bfloat16)
    w_mat = jnp.pad(w_mat, ((0, 0), (0, k_pad - K)))
    b_mat = bias.reshape(Cout, 1).astype(jnp.float32)

    grid = (B, n_pad // tn, nk)

    cost = pl.CostEstimate(
        flops=2 * B * n_pad * k_pad * Cout,
        transcendentals=0,
        # Count the im2col operand twice (write + read): allow_input_fusion is only
        # a hint and XLA may materialize it.  Output is bf16 now.
        bytes_accessed=(2 * B * k_pad * n_pad * 2)
                       + (Cout * k_pad * 2)
                       + (B * Cout * n_pad * 2),
    )

    out = pl.pallas_call(
        _conv_matmul_relu_kernel,
        out_shape=jax.ShapeDtypeStruct((B, Cout, n_pad), jnp.bfloat16),
        grid=grid,
        in_specs=[
            pl.BlockSpec((None, tk, tn), lambda b, j, k: (b, k, j)),   # cols tile
            pl.BlockSpec((Cout, tk), lambda b, j, k: (0, k)),          # weights
            pl.BlockSpec((Cout, 1), lambda b, j, k: (0, 0)),           # bias (resident)
        ],
        out_specs=pl.BlockSpec((None, Cout, tn), lambda b, j, k: (b, 0, j)),
        scratch_shapes=[pltpu.VMEM((Cout, tn), jnp.float32)],
        compiler_params=pltpu.CompilerParams(
            dimension_semantics=("parallel", "parallel", "arbitrary"),
            vmem_limit_bytes=vmem_limit,
            allow_input_fusion=[True, False, False],
        ),
        cost_estimate=cost,
    )(x_cols, w_mat, b_mat)

    if n_pad != N:
        out = out[:, :, :N]
    # (B, Cout, N) -> (B, Cout, OH, OW): trailing-dim split, no transpose.
    return out.reshape(B, Cout, OH, OW)


def init_encoder_params(key, basechannels, num_encoders, ks):
    """Deterministic init matching nn.Conv2d defaults (uniform +/- 1/sqrt(fan_in))."""
    params = []
    in_chs = [basechannels * 2 ** i for i in range(num_encoders)]
    out_chs = [basechannels * 2 ** (i + 1) for i in range(num_encoders)]
    for cin, cout in zip(in_chs, out_chs):
        key, k1, k2 = jax.random.split(key, 3)
        fan_in = cin * ks * ks
        bound = 1.0 / float(fan_in) ** 0.5
        w = jax.random.uniform(k1, (cout, cin, ks, ks), jnp.float32, -bound, bound)
        b = jax.random.uniform(k2, (cout,), jnp.float32, -bound, bound)
        params.append((w, b))
    return params


@functools.partial(jax.jit, static_argnums=(2,))
def encoder_forward(x_nchw, params, ks):
    """Matches Encoder.forward (useRC=False, norm=None): list of per-stage NCHW outputs.

    Stage outputs are bf16; each subsequent stage's bf16 cast is then a no-op.
    """
    blocks = []
    x = x_nchw
    for w, b in params:
        x = conv2d_stride2_relu(x, w, b, ks)
        blocks.append(x)  # NCHW, bf16
    return blocks


def _ref_conv_stage(x_nchw, w, b, ks):
    """Pure-JAX reference with the same bf16 operand quantization / f32 accumulation."""
    pad = ks // 2
    xq = x_nchw.astype(jnp.bfloat16).astype(jnp.float32)
    wq = w.astype(jnp.bfloat16).astype(jnp.float32)
    y = jax.lax.conv_general_dilated(
        xq, wq, window_strides=(2, 2),
        padding=((pad, pad), (pad, pad)),
        dimension_numbers=("NCHW", "OIHW", "NCHW"),
        precision=jax.lax.Precision.HIGHEST,
    )
    y = y + b[None, :, None, None]
    return jnp.maximum(y, 0.0)


if __name__ == "__main__":
    # Small config consistent with the module: basechannels=4, num_encoders=2, ks=3
    basechannels, num_encoders, ks = 4, 2, 3
    B, H, W = 2, 16, 16

    key = jax.random.PRNGKey(0)
    key, kx = jax.random.split(key)
    x = jax.random.normal(kx, (B, basechannels, H, W), jnp.float32)  # NCHW like torch

    params = init_encoder_params(key, basechannels, num_encoders, ks)

    blocks = encoder_forward(x, params, ks)
    blocks = [jax.block_until_ready(b) for b in blocks]

    # Per-stage check against a pure-JAX reference given identical stage inputs.
    # Expected shapes: (2, 8, 8, 8) and (2, 16, 4, 4) in NCHW, dtype bf16.
    x_in = x
    for (w, b), got in zip(params, blocks):
        ref = _ref_conv_stage(x_in, w, b, ks)
        assert got.shape == ref.shape, (got.shape, ref.shape)
        assert got.dtype == jnp.bfloat16, got.dtype
        assert jnp.allclose(got.astype(jnp.float32), ref, atol=2e-2, rtol=2e-2), \
            "mismatch vs reference"
        x_in = got

    # Extra check: exercise the K-axis tiled accumulation path (nk > 1) with a
    # forced small reduction tile (K = 16*9 = 144 -> k_pad = 256, 2 K-steps).
    k0 = jax.random.PRNGKey(123)
    k1, k2, k3 = jax.random.split(k0, 3)
    cin2, cout2 = 16, 32
    x2 = jax.random.normal(k1, (2, cin2, 16, 16), jnp.float32)
    w2 = jax.random.uniform(k2, (cout2, cin2, ks, ks), jnp.float32, -0.1, 0.1)
    b2 = jax.random.uniform(k3, (cout2,), jnp.float32, -0.1, 0.1)
    got2 = jax.block_until_ready(conv2d_stride2_relu(x2, w2, b2, ks, tiles=(128, 128)))
    ref2 = _ref_conv_stage(x2, w2, b2, ks)
    assert got2.shape == ref2.shape, (got2.shape, ref2.shape)
    assert jnp.allclose(got2.astype(jnp.float32), ref2, atol=2e-2, rtol=2e-2), \
        "mismatch vs reference (K-tiled path)"

    print("KERNEL_OK")
</pallas_src>

<mosaic_0001>
module attributes {stable_mosaic.version = 11 : i64} {
  func.func @_conv_matmul_relu_kernel(%arg0: i32, %arg1: i32, %arg2: i32, %arg3: memref<1x36x128xbf16, #tpu.memory_space<vmem>>, %arg4: memref<8x36xbf16, #tpu.memory_space<vmem>>, %arg5: memref<8x1xf32, #tpu.memory_space<vmem>>, %arg6: memref<1x8x128xbf16, #tpu.memory_space<vmem>>, %arg7: memref<8x128xf32, #tpu.memory_space<vmem>>) attributes {dimension_semantics = [#tpu.dimension_semantics<parallel>, #tpu.dimension_semantics<parallel>, #tpu.dimension_semantics<arbitrary>], iteration_bounds = array<i64: 2, 1, 1>, scalar_prefetch = 0 : i64, scratch_operands = 1 : i64, tpu.core_type = #tpu.core_type<tc>, window_params = [{transform_indices = @transform_0, window_bounds = array<i64: 1, 36, 128>}, {transform_indices = @transform_1, window_bounds = array<i64: 8, 36>}, {pipeline_mode = #tpu.pipeline_mode<synchronous>, transform_indices = @transform_2, window_bounds = array<i64: 8, 1>}, {transform_indices = @transform_3, window_bounds = array<i64: 1, 8, 128>}]} {
    %c0_i32 = arith.constant 0 : i32
    %0 = arith.cmpi eq, %arg2, %c0_i32 : i32
    %1 = arith.extui %0 : i1 to i32
    %c0_i32_0 = arith.constant 0 : i32
    %2 = arith.cmpi ne, %1, %c0_i32_0 : i32
    scf.if %2 {
      %cst_11 = arith.constant 0.000000e+00 : f32
      %13 = vector.broadcast %cst_11 : f32 to vector<8x128xf32>
      %c0_12 = arith.constant 0 : index
      %c0_13 = arith.constant 0 : index
      %14 = vector.load %arg7[%c0_12, %c0_13] : memref<8x128xf32, #tpu.memory_space<vmem>>, vector<8x128xf32>
      tpu.vector_store %arg7[%c0_12, %c0_13], %13 {strides = array<i32>} : memref<8x128xf32, #tpu.memory_space<vmem>>, vector<8x128xf32>,
    } else {
    }
    %c0 = arith.constant 0 : index
    %c0_1 = arith.constant 0 : index
    %3 = vector.load %arg7[%c0, %c0_1] : memref<8x128xf32, #tpu.memory_space<vmem>>, vector<8x128xf32>
    %c0_2 = arith.constant 0 : index
    %c0_3 = arith.constant 0 : index
    %4 = vector.load %arg4[%c0_2, %c0_3] : memref<8x36xbf16, #tpu.memory_space<vmem>>, vector<8x36xbf16>
    %c0_4 = arith.constant 0 : index
    %c0_5 = arith.constant 0 : index
    %c0_6 = arith.constant 0 : index
    %5 = vector.load %arg3[%c0_4, %c0_5, %c0_6] : memref<1x36x128xbf16, #tpu.memory_space<vmem>>, vector<1x36x128xbf16>
    %6 = vector.shape_cast %5 : vector<1x36x128xbf16> to vector<36x128xbf16>
    %cst = arith.constant dense<0.000000e+00> : vector<8x128xf32>
    %7 = tpu.matmul %4, %6, %cst {dimension_numbers = #tpu.dot_dimension_numbers<[1], [0], [0], [1], [0, 0, 1, 1], [], []>} : vector<8x36xbf16>, vector<36x128xbf16>, vector<8x128xf32> -> vector<8x128xf32>
    %8 = arith.addf %3, %7 : vector<8x128xf32>
    %c0_7 = arith.constant 0 : index
    %c0_8 = arith.constant 0 : index
    %9 = vector.load %arg7[%c0_7, %c0_8] : memref<8x128xf32, #tpu.memory_space<vmem>>, vector<8x128xf32>
    tpu.vector_store %arg7[%c0_7, %c0_8], %8 {strides = array<i32>} : memref<8x128xf32, #tpu.memory_space<vmem>>, vector<8x128xf32>,
    %c0_i32_9 = arith.constant 0 : i32
    %10 = arith.cmpi eq, %arg2, %c0_i32_9 : i32
    %11 = arith.extui %10 : i1 to i32
    %c0_i32_10 = arith.constant 0 : i32
    %12 = arith.cmpi ne, %11, %c0_i32_10 : i32
    scf.if %12 {
      %c0_11 = arith.constant 0 : index
      %c0_12 = arith.constant 0 : index
      %13 = vector.load %arg7[%c0_11, %c0_12] : memref<8x128xf32, #tpu.memory_space<vmem>>, vector<8x128xf32>
      %c0_13 = arith.constant 0 : index
      %c0_14 = arith.constant 0 : index
      %14 = vector.load %arg5[%c0_13, %c0_14] : memref<8x1xf32, #tpu.memory_space<vmem>>, vector<8x1xf32>
      %15 = vector.broadcast %14 : vector<8x1xf32> to vector<8x128xf32>
      %16 = arith.addf %13, %15 : vector<8x128xf32>
      %cst_15 = arith.constant 0.000000e+00 : f32
      %17 = vector.broadcast %cst_15 : f32 to vector<8x128xf32>
      %18 = arith.maximumf %16, %17 : vector<8x128xf32>
      %19 = arith.truncf %18 : vector<8x128xf32> to vector<8x128xbf16>
      %c0_16 = arith.constant 0 : index
      %c0_17 = arith.constant 0 : index
      %c0_18 = arith.constant 0 : index
      %20 = vector.load %arg6[%c0_16, %c0_17, %c0_18] : memref<1x8x128xbf16, #tpu.memory_space<vmem>>, vector<1x8x128xbf16>
      %21 = vector.shape_cast %20 : vector<1x8x128xbf16> to vector<8x128xbf16>
      %22 = vector.shape_cast %19 : vector<8x128xbf16> to vector<1x8x128xbf16>
      tpu.vector_store %arg6[%c0_16, %c0_17, %c0_18], %22 {strides = array<i32>} : memref<1x8x128xbf16, #tpu.memory_space<vmem>>, vector<1x8x128xbf16>,
    } else {
    }
    return
  }
  func.func @transform_0(%arg0: i32, %arg1: i32, %arg2: i32) -> (i32, i32, i32) {
    %c0_i32 = arith.constant 0 : i32
    return %arg0, %arg2, %arg1 : i32, i32, i32
  }
  func.func @transform_1(%arg0: i32, %arg1: i32, %arg2: i32) -> (i32, i32) {
    %c0_i32 = arith.constant 0 : i32
    %c0_i32_0 = arith.constant 0 : i32
    return %c0_i32, %arg2 : i32, i32
  }
  func.func @transform_2(%arg0: i32, %arg1: i32, %arg2: i32) -> (i32, i32) {
    %c0_i32 = arith.constant 0 : i32
    %c0_i32_0 = arith.constant 0 : i32
    %c0_i32_1 = arith.constant 0 : i32
    return %c0_i32, %c0_i32_0 : i32, i32
  }
  func.func @transform_3(%arg0: i32, %arg1: i32, %arg2: i32) -> (i32, i32, i32) {
    %c0_i32 = arith.constant 0 : i32
    %c0_i32_0 = arith.constant 0 : i32
    return %arg0, %c0_i32, %arg1 : i32, i32, i32
  }
}

module attributes {stable_mosaic.version = 11 : i64} {
  func.func @_conv_matmul_relu_kernel(%arg0: i32, %arg1: i32, %arg2: i32, %arg3: memref<1x72x128xbf16, #tpu.memory_space<vmem>>, %arg4: memref<16x72xbf16, #tpu.memory_space<vmem>>, %arg5: memref<16x1xf32, #tpu.memory_space<vmem>>, %arg6: memref<1x16x128xbf16, #tpu.memory_space<vmem>>, %arg7: memref<16x128xf32, #tpu.memory_space<vmem>>) attributes {dimension_semantics = [#tpu.dimension_semantics<parallel>, #tpu.dimension_semantics<parallel>, #tpu.dimension_semantics<arbitrary>], iteration_bounds = array<i64: 2, 1, 1>, scalar_prefetch = 0 : i64, scratch_operands = 1 : i64, tpu.core_type = #tpu.core_type<tc>, window_params = [{transform_indices = @transform_0, window_bounds = array<i64: 1, 72, 128>}, {transform_indices = @transform_1, window_bounds = array<i64: 16, 72>}, {pipeline_mode = #tpu.pipeline_mode<synchronous>, transform_indices = @transform_2, window_bounds = array<i64: 16, 1>}, {transform_indices = @transform_3, window_bounds = array<i64: 1, 16, 128>}]} {
    %c0_i32 = arith.constant 0 : i32
    %0 = arith.cmpi eq, %arg2, %c0_i32 : i32
    %1 = arith.extui %0 : i1 to i32
    %c0_i32_0 = arith.constant 0 : i32
    %2 = arith.cmpi ne, %1, %c0_i32_0 : i32
    scf.if %2 {
      %cst_11 = arith.constant 0.000000e+00 : f32
      %13 = vector.broadcast %cst_11 : f32 to vector<16x128xf32>
      %c0_12 = arith.constant 0 : index
      %c0_13 = arith.constant 0 : index
      %14 = vector.load %arg7[%c0_12, %c0_13] : memref<16x128xf32, #tpu.memory_space<vmem>>, vector<16x128xf32>
      tpu.vector_store %arg7[%c0_12, %c0_13], %13 {strides = array<i32>} : memref<16x128xf32, #tpu.memory_space<vmem>>, vector<16x128xf32>,
    } else {
    }
    %c0 = arith.constant 0 : index
    %c0_1 = arith.constant 0 : index
    %3 = vector.load %arg7[%c0, %c0_1] : memref<16x128xf32, #tpu.memory_space<vmem>>, vector<16x128xf32>
    %c0_2 = arith.constant 0 : index
    %c0_3 = arith.constant 0 : index
    %4 = vector.load %arg4[%c0_2, %c0_3] : memref<16x72xbf16, #tpu.memory_space<vmem>>, vector<16x72xbf16>
    %c0_4 = arith.constant 0 : index
    %c0_5 = arith.constant 0 : index
    %c0_6 = arith.constant 0 : index
    %5 = vector.load %arg3[%c0_4, %c0_5, %c0_6] : memref<1x72x128xbf16, #tpu.memory_space<vmem>>, vector<1x72x128xbf16>
    %6 = vector.shape_cast %5 : vector<1x72x128xbf16> to vector<72x128xbf16>
    %cst = arith.constant dense<0.000000e+00> : vector<16x128xf32>
    %7 = tpu.matmul %4, %6, %cst {dimension_numbers = #tpu.dot_dimension_numbers<[1], [0], [0], [1], [0, 0, 1, 1], [], []>} : vector<16x72xbf16>, vector<72x128xbf16>, vector<16x128xf32> -> vector<16x128xf32>
    %8 = arith.addf %3, %7 : vector<16x128xf32>
    %c0_7 = arith.constant 0 : index
    %c0_8 = arith.constant 0 : index
    %9 = vector.load %arg7[%c0_7, %c0_8] : memref<16x128xf32, #tpu.memory_space<vmem>>, vector<16x128xf32>
    tpu.vector_store %arg7[%c0_7, %c0_8], %8 {strides = array<i32>} : memref<16x128xf32, #tpu.memory_space<vmem>>, vector<16x128xf32>,
    %c0_i32_9 = arith.constant 0 : i32
    %10 = arith.cmpi eq, %arg2, %c0_i32_9 : i32
    %11 = arith.extui %10 : i1 to i32
    %c0_i32_10 = arith.constant 0 : i32
    %12 = arith.cmpi ne, %11, %c0_i32_10 : i32
    scf.if %12 {
      %c0_11 = arith.constant 0 : index
      %c0_12 = arith.constant 0 : index
      %13 = vector.load %arg7[%c0_11, %c0_12] : memref<16x128xf32, #tpu.memory_space<vmem>>, vector<16x128xf32>
      %c0_13 = arith.constant 0 : index
      %c0_14 = arith.constant 0 : index
      %14 = vector.load %arg5[%c0_13, %c0_14] : memref<16x1xf32, #tpu.memory_space<vmem>>, vector<16x1xf32>
      %15 = vector.broadcast %14 : vector<16x1xf32> to vector<16x128xf32>
      %16 = arith.addf %13, %15 : vector<16x128xf32>
      %cst_15 = arith.constant 0.000000e+00 : f32
      %17 = vector.broadcast %cst_15 : f32 to vector<16x128xf32>
      %18 = arith.maximumf %16, %17 : vector<16x128xf32>
      %19 = arith.truncf %18 : vector<16x128xf32> to vector<16x128xbf16>
      %c0_16 = arith.constant 0 : index
      %c0_17 = arith.constant 0 : index
      %c0_18 = arith.constant 0 : index
      %20 = vector.load %arg6[%c0_16, %c0_17, %c0_18] : memref<1x16x128xbf16, #tpu.memory_space<vmem>>, vector<1x16x128xbf16>
      %21 = vector.shape_cast %20 : vector<1x16x128xbf16> to vector<16x128xbf16>
      %22 = vector.shape_cast %19 : vector<16x128xbf16> to vector<1x16x128xbf16>
      tpu.vector_store %arg6[%c0_16, %c0_17, %c0_18], %22 {strides = array<i32>} : memref<1x16x128xbf16, #tpu.memory_space<vmem>>, vector<1x16x128xbf16>,
    } else {
    }
    return
  }
  func.func @transform_0(%arg0: i32, %arg1: i32, %arg2: i32) -> (i32, i32, i32) {
    %c0_i32 = arith.constant 0 : i32
    return %arg0, %arg2, %arg1 : i32, i32, i32
  }
  func.func @transform_1(%arg0: i32, %arg1: i32, %arg2: i32) -> (i32, i32) {
    %c0_i32 = arith.constant 0 : i32
    %c0_i32_0 = arith.constant 0 : i32
    return %c0_i32, %arg2 : i32, i32
  }
  func.func @transform_2(%arg0: i32, %arg1: i32, %arg2: i32) -> (i32, i32) {
    %c0_i32 = arith.constant 0 : i32
    %c0_i32_0 = arith.constant 0 : i32
    %c0_i32_1 = arith.constant 0 : i32
    return %c0_i32, %c0_i32_0 : i32, i32
  }
  func.func @transform_3(%arg0: i32, %arg1: i32, %arg2: i32) -> (i32, i32, i32) {
    %c0_i32 = arith.constant 0 : i32
    %c0_i32_0 = arith.constant 0 : i32
    return %arg0, %c0_i32, %arg1 : i32, i32, i32
  }
}

</mosaic_0001>

<bundles_post_ra>
// kernel: encoder_forward.5
= control target key start
LH: loop header
LB: loop body
LE: loop exit
PB: predicated region body
PF: predicated region fallthrough
CT: control target
= control target key end

     0   :  { %s760_s17 = smov 0   ;;  %s762_s18 = smov 0   ;;  %s814_s0 = inlined_call_operand.vmem [shape: bf16[8,36], index: 0, kind: input, shape index: {}]   ;;  %s815_s1 = inlined_call_operand.vmem [shape: f32[8,1], index: 1, kind: input, shape index: {}]   ;;  %s816_s2 = inlined_call_operand.vmem [shape: bf16[2,36,64], index: 2, kind: input, shape index: {}]   ;;  %s817_s3 = inlined_call_operand.<no memory space> [shape: bf16[], index: 3, kind: input, shape index: {}]   ;;  %s818_s4 = inlined_call_operand.vmem [shape: bf16[2,8,128], index: 4, kind: output, shape index: {}]  }
   0x1   :  { %v9_v0 = vstv %s817_s3  ;;  %s764_s19 = smov 0  }
   0x2   :  { %v758_v1 = vunpack.i.l.bf16 %v9_v0 }
   0x3 LB: > { %s38_s3 = sadd.s32 1, %s721_s18  ;;  %p644_p0 = scmp.ge.s32.totalorder %s725_s19, 1  ;;  %s725_s19 = sphi %s764_s19, %s19_s19   ;;  %s721_s18 = sphi %s762_s18, %s820_s18   ;;  %s717_s17 = sphi %s760_s17, %s819_s17  }
   0x4   : > { %p40_p1 = scmp.ge.s32.totalorder %s38_s3, 2  ;;  %p189_p2 = scmp.lt.s32.totalorder %s725_s19, 3 }
   0x6   : > { %s822_s3 = smov (%p40_p1, %s38_s3), 0  ;;  %p190_p3 = pnand %p644_p0, %p189_p2 }
   0x8   : > { %193 = sbr.rel (%p190_p3) target bundleno = 265 (0x109), region = 32 }
   0xf   : > { %p231_p4 = scmp.lt.s32.totalorder %s717_s17, 1  ;;  %v283_v2 = vlaneseq  ;;  %v727_v3 = vmov 0.0   ;;  %vm728_vm0 = vmmov 0   ;;  %v530_v4 = vld [vmem:[%s815_s1] sm:$0xff]  ;;  %v729_v6 = vmov 0  }
  0x10   : > { %661 = vmatprep.subr.bf16.mxu0 %v727_v3  ;;  %667 = vmatprep.mubr.msk.bf16.mxu0 %vm728_vm0, %v727_v3  ;;  %vm480_vm3 = vcmask 1041408   ;;  %v455_v32 = vld [vmem:[%s814_s0] sm:$0xf]  ;;  %vm476_vm4 = vcmask 293888  }
  0x11   : > { %s824_s17 = smov (!%p231_p4, %s717_s17), 1  ;;  %v432_v5 = vshrl.u32 %v283_v2, 7  ;;  %699 = vset.pattern.permute.xlu0 %v729_v6  ;;  %v284_v7 = vand.u32 127, %v283_v2 }
  0x12   : > { %533 = vperm.xlu0 %699, %v530_v4   ;;  %s671_s22 = smul.u32 20, %s824_s17  ;;  %s646_s28 = sshll.u32 %s824_s17, 2 }
  0x13   : > { %v434_v8 = vadd.s32 32, %v432_v5  ;;  %vm287_vm1 = vcmp.lt.s32.totalorder %v284_v7, 64  ;;  %s255_s5 = scalar_lea.vmem %s818_s4, %s646_s28 }
  0x14   : > { %s241_s25 = scalar_lea.vmem %s816_s2, %s671_s22 }
  0x15   : > { %v268_v9 = vld [vmem:[%s241_s25] sm:$0xff]   ;;  %v648_v10 = vld [vmem:[%s241_s25 + $0x8] sm:$0xff]   ;;  %v650_v11 = vld [vmem:[%s241_s25 + $0x10] sm:$0xf]  ;;  %vm435_vm2 = vcmp.lt.s32.totalorder %v434_v8, 36 }
  0x16   : > { %v269_v12 = vunpack.c.l.bf16 %v268_v9  ;;  %v306_v13 = vunpack.c.h.bf16 %v268_v9  ;;  %v345_v14 = vunpack.c.l.bf16 %v648_v10  ;;  %v384_v15 = vunpack.c.h.bf16 %v648_v10 }
  0x17   : > { %v423_v16 = vunpack.c.l.bf16 %v650_v11 }
  0x18   : > { %v288_v17 = vsel %vm287_vm1, %v269_v12, %v758_v1  ;;  %v326_v18 = vsel %vm287_vm1, %v306_v13, %v758_v1  ;;  %v365_v19 = vsel %vm287_vm1, %v345_v14, %v758_v1  ;;  %v404_v20 = vsel %vm287_vm1, %v384_v15, %v758_v1 }
  0x19   : > { %v289_v21 = vpack.c.bf16 %v727_v3, %v288_v17  ;;  %v328_v22 = vpack.c.bf16 %v727_v3, %v326_v18  ;;  %v367_v23 = vpack.c.bf16 %v727_v3, %v365_v19  ;;  %v406_v24 = vpack.c.bf16 %v727_v3, %v404_v20 }
  0x1a   : > { %v436_v25 = vsel %vm435_vm2, %v423_v16, %v758_v1 }
  0x1b   : > { %291 = vst [vmem:[#allocation8] sm:$0xf] %v289_v21  ;;  %330 = vst [vmem:[#allocation8 + $0x4] sm:$0xf] %v328_v22  ;;  %v443_v26 = vsel %vm287_vm1, %v436_v25, %v758_v1 }
  0x1c   : > { %369 = vst [vmem:[#allocation8 + $0x8] sm:$0xf] %v367_v23  ;;  %408 = vst [vmem:[#allocation8 + $0xc] sm:$0xf] %v406_v24  ;;  %v445_v27 = vpack.c.bf16 %v727_v3, %v443_v26 }
  0x1e   : > { %447 = vst [vmem:[#allocation8 + $0x10] sm:$0xf] %v445_v27 }
  0x22   : > { %v700_v28 = vld [vmem:[#allocation8] sm:$0xff]  }
  0x23   : > { %662 = vmatpush3.bf16.msra.mxu0 %v700_v28  ;;  %v701_v29 = vld [vmem:[#allocation8 + $0x8] sm:$0xff]  }
  0x24   : > { %663 = vmatprep.subr.bf16.mxu0 %v727_v3 }
  0x25   : > { %v702_v30 = vld [vmem:[#allocation8 + $0x10] ss:$0 sps:$4 sm:$0x33]  }
  0x26   : > { %v482_v31 = vsel %vm480_vm3, %v702_v30, 0 }
  0x27   : > { %664 = vmatpush3.bf16.msra.mxu0 %v701_v29 }
  0x28   : > { %665 = vmatprep.subr.bf16.mxu0 %v727_v3 }
  0x2b   : > { %666 = vmatpush3.bf16.msra.mxu0 %v482_v31 }
  0x2e   : > { %668 = vmatmul.mubr.msk.bf16.vlgmr.msra.gmra.mrb[0].mxu0 %vm476_vm4, %v455_v32 }
  0x91   : > { %v534_v33 = vpop.permute.xlu0 %533 }
 0x101   : > { %v518_v34 = vpop.f32.mrb[0].mxu0 }
 0x102   : > { %v536_v35 = vadd.f32 %v534_v33, %v518_v34  ;;  %v669_v36 = vpop.f32.mrb[1].mxu0 }
 0x103   : > { %v521_v37 = vpop.f32.mrb[2].mxu0 }
 0x104   : > { %v537_v38 = vmax.f32 %v536_v35, 0.0  ;;  %v670_v39 = vpop.f32.mrb[3].mxu0 }
 0x106   : > { %v538_v40 = vpack.c.bf16 %v537_v38, %v537_v38 }
 0x108   : > { %539 = vst [vmem:[%s255_s5] sm:$0xf] %v538_v40 }
 0x109 PF: > { %s19_s19 = sadd.s32 1, %s725_s19   ;;  %s819_s17 = smov %s721_s18 }
 0x10a   : > { %p16_p5 = scmp.ge.s32.totalorder %s19_s19, 4   ;;  %s820_s18 = smov %s822_s3 }
 0x10c   :  { %18 = sbr.rel (!%p16_p5) target bundleno = 3 (0x3), region = 81 }

// kernel: encoder_forward.4
= control target key start
LH: loop header
LB: loop body
LE: loop exit
PB: predicated region body
PF: predicated region fallthrough
CT: control target
= control target key end

     0   :  { %s924_s17 = smov 0   ;;  %s926_s18 = smov 0   ;;  %s1003_s0 = inlined_call_operand.vmem [shape: bf16[16,72], index: 0, kind: input, shape index: {}]   ;;  %s1004_s1 = inlined_call_operand.vmem [shape: f32[16,1], index: 1, kind: input, shape index: {}]   ;;  %s1005_s2 = inlined_call_operand.vmem [shape: bf16[2,72,16], index: 2, kind: input, shape index: {}]   ;;  %s1006_s3 = inlined_call_operand.<no memory space> [shape: bf16[], index: 3, kind: input, shape index: {}]   ;;  %s1007_s4 = inlined_call_operand.vmem [shape: bf16[2,16,128], index: 4, kind: output, shape index: {}]  }
   0x1   :  { %v9_v0 = vstv %s1006_s3  ;;  %s928_s19 = smov 0  }
   0x2   :  { %v922_v1 = vunpack.i.l.bf16 %v9_v0 }
   0x3 LB: > { %s38_s3 = sadd.s32 1, %s885_s18  ;;  %p781_p0 = scmp.ge.s32.totalorder %s889_s19, 1  ;;  %s889_s19 = sphi %s928_s19, %s19_s19   ;;  %s885_s18 = sphi %s926_s18, %s1009_s18   ;;  %s881_s17 = sphi %s924_s17, %s1008_s17  }
   0x4   : > { %p40_p1 = scmp.ge.s32.totalorder %s38_s3, 2  ;;  %p189_p2 = scmp.lt.s32.totalorder %s889_s19, 3 }
   0x6   : > { %s1011_s3 = smov (%p40_p1, %s38_s3), 0  ;;  %p190_p3 = pnand %p781_p0, %p189_p2 }
   0x8   : > { %193 = sbr.rel (%p190_p3) target bundleno = 275 (0x113), region = 32 }
   0xf   : > { %p232_p4 = scmp.lt.s32.totalorder %s881_s17, 1  ;;  %v278_v2 = vlaneseq  ;;  %v891_v3 = vmov 0.0   ;;  %vm892_vm0 = vmmov 0   ;;  %v645_v4 = vld [vmem:[%s1004_s1] sm:$0xff]  ;;  %v893_v5 = vmov 0   ;;  %v646_v7 = vld [vmem:[%s1004_s1 + $0x8] sm:$0xff] }
  0x10   : > { %818 = vmatprep.subr.bf16.mxu0 %v891_v3  ;;  %828 = vmatprep.mubr.msk.bf16.mxu0 %vm892_vm0, %v891_v3  ;;  %vm591_vm2 = vcmask 1043456   ;;  %v866_v46 = vld [vmem:[%s1003_s0] sm:$0xff]   ;;  %vm587_vm3 = vcmask 588800  }
  0x11   : > { %s1013_s17 = smov (!%p232_p4, %s881_s17), 1  ;;  %860 = vset.pattern.permute.xlu0 %v893_v5  ;;  %v279_v6 = vand.u32 127, %v278_v2 }
  0x12   : > { %649 = vperm.xlu0 %860, %v645_v4   ;;  %s832_s22 = smul.u32 36, %s1013_s17  ;;  %s804_s30 = sshll.u32 %s1013_s17, 3 }
  0x13   : > { %vm282_vm1 = vcmp.lt.s32.totalorder %v279_v6, 16  ;;  %s257_s7 = scalar_lea.vmem %s1007_s4, %s804_s30 }
  0x14   : > { %s242_s27 = scalar_lea.vmem %s1005_s2, %s832_s22 }
  0x15   : > { %v270_v8 = vld [vmem:[%s242_s27] sm:$0xff]   ;;  %v786_v9 = vld [vmem:[%s242_s27 + $0x8] sm:$0xff]   ;;  %v788_v10 = vld [vmem:[%s242_s27 + $0x10] sm:$0xff]  }
  0x16   : > { %654 = vperm.xlu0 %860, %v646_v7   ;;  %v271_v11 = vunpack.c.l.bf16 %v270_v8  ;;  %v301_v12 = vunpack.c.h.bf16 %v270_v8  ;;  %v332_v13 = vunpack.c.l.bf16 %v786_v9  ;;  %v363_v14 = vunpack.c.h.bf16 %v786_v9  ;;  %v790_v15 = vld [vmem:[%s242_s27 + $0x18] sm:$0xff]   ;;  %v792_v28 = vld [vmem:[%s242_s27 + $0x20] sm:$0xf] }
  0x17   : > { %v394_v16 = vunpack.c.l.bf16 %v788_v10  ;;  %v425_v17 = vunpack.c.h.bf16 %v788_v10  ;;  %v456_v18 = vunpack.c.l.bf16 %v790_v15  ;;  %v487_v19 = vunpack.c.h.bf16 %v790_v15 }
  0x18   : > { %v283_v20 = vsel %vm282_vm1, %v271_v11, %v922_v1  ;;  %v313_v21 = vsel %vm282_vm1, %v301_v12, %v922_v1  ;;  %v344_v22 = vsel %vm282_vm1, %v332_v13, %v922_v1  ;;  %v375_v23 = vsel %vm282_vm1, %v363_v14, %v922_v1 }
  0x19   : > { %v284_v24 = vpack.c.bf16 %v891_v3, %v283_v20  ;;  %v315_v25 = vpack.c.bf16 %v891_v3, %v313_v21  ;;  %v346_v26 = vpack.c.bf16 %v891_v3, %v344_v22  ;;  %v377_v27 = vpack.c.bf16 %v891_v3, %v375_v23 }
  0x1a   : > { %v406_v29 = vsel %vm282_vm1, %v394_v16, %v922_v1  ;;  %v437_v30 = vsel %vm282_vm1, %v425_v17, %v922_v1  ;;  %v468_v31 = vsel %vm282_vm1, %v456_v18, %v922_v1  ;;  %v499_v32 = vsel %vm282_vm1, %v487_v19, %v922_v1 }
  0x1b   : > { %286 = vst [vmem:[#allocation8] sm:$0xf] %v284_v24  ;;  %317 = vst [vmem:[#allocation8 + $0x4] sm:$0xf] %v315_v25  ;;  %v408_v33 = vpack.c.bf16 %v891_v3, %v406_v29  ;;  %v439_v34 = vpack.c.bf16 %v891_v3, %v437_v30  ;;  %v470_v35 = vpack.c.bf16 %v891_v3, %v468_v31  ;;  %v518_v37 = vunpack.c.l.bf16 %v792_v28 }
  0x1c   : > { %348 = vst [vmem:[#allocation8 + $0x8] sm:$0xf] %v346_v26  ;;  %379 = vst [vmem:[#allocation8 + $0xc] sm:$0xf] %v377_v27  ;;  %v501_v36 = vpack.c.bf16 %v891_v3, %v499_v32 }
  0x1d   : > { %410 = vst [vmem:[#allocation8 + $0x10] sm:$0xf] %v408_v33  ;;  %441 = vst [vmem:[#allocation8 + $0x14] sm:$0xf] %v439_v34  ;;  %v530_v38 = vsel %vm282_vm1, %v518_v37, %v922_v1 }
  0x1e   : > { %472 = vst [vmem:[#allocation8 + $0x18] sm:$0xf] %v470_v35  ;;  %503 = vst [vmem:[#allocation8 + $0x1c] sm:$0xf] %v501_v36  ;;  %v532_v39 = vpack.c.bf16 %v891_v3, %v530_v38 }
  0x20   : > { %534 = vst [vmem:[#allocation8 + $0x20] sm:$0xf] %v532_v39 }
  0x22   : > { %v861_v40 = vld [vmem:[#allocation8] sm:$0xff]  }
  0x23   : > { %819 = vmatpush3.bf16.msra.mxu0 %v861_v40  ;;  %v862_v41 = vld [vmem:[#allocation8 + $0x8] sm:$0xff]  }
  0x24   : > { %820 = vmatprep.subr.bf16.mxu0 %v891_v3  ;;  %v863_v42 = vld [vmem:[#allocation8 + $0x10] sm:$0xff]  }
  0x25   : > { %v864_v43 = vld [vmem:[#allocation8 + $0x18] sm:$0xff]  }
  0x27   : > { %821 = vmatpush3.bf16.msra.mxu0 %v862_v41  ;;  %v865_v44 = vld [vmem:[#allocation8 + $0x20] ss:$0 sps:$4 sm:$0xff]  }
  0x28   : > { %822 = vmatprep.subr.bf16.mxu0 %v891_v3  ;;  %v593_v45 = vsel %vm591_vm2, %v865_v44, 0 }
  0x2b   : > { %823 = vmatpush3.bf16.msra.mxu0 %v863_v42 }
  0x2c   : > { %824 = vmatprep.subr.bf16.mxu0 %v891_v3 }
  0x2f   : > { %825 = vmatpush3.bf16.msra.mxu0 %v864_v43 }
  0x30   : > { %826 = vmatprep.subr.bf16.mxu0 %v891_v3 }
  0x33   : > { %827 = vmatpush3.bf16.msra.mxu0 %v593_v45 }
  0x36   : > { %829 = vmatmul.mubr.msk.bf16.vlgmr.msra.gmra.mrb[0].mxu0 %vm587_vm3, %v866_v46 }
  0x91   : > { %v650_v47 = vpop.permute.xlu0 %649 }
  0x95   : > { %v655_v51 = vpop.permute.xlu0 %654 }
 0x109   : > { %v629_v48 = vpop.f32.mrb[0].mxu0 }
 0x10a   : > { %v657_v49 = vadd.f32 %v650_v47, %v629_v48  ;;  %v830_v50 = vpop.f32.mrb[1].mxu0 }
 0x10b   : > { %v632_v52 = vpop.f32.mrb[2].mxu0 }
 0x10c   : > { %v658_v53 = vadd.f32 %v655_v51, %v632_v52  ;;  %v831_v54 = vpop.f32.mrb[3].mxu0  ;;  %v659_v55 = vmax.f32 %v657_v49, 0.0 }
 0x10e   : > { %v660_v56 = vmax.f32 %v658_v53, 0.0 }
 0x110   : > { %v810_v57 = vpack.c.bf16 %v660_v56, %v659_v55 }
 0x112   : > { %811 = vst [vmem:[%s257_s7] sm:$0xff] %v810_v57  }
 0x113 PF: > { %s19_s19 = sadd.s32 1, %s889_s19   ;;  %s1008_s17 = smov %s885_s18 }
 0x114   : > { %p16_p5 = scmp.ge.s32.totalorder %s19_s19, 4   ;;  %s1009_s18 = smov %s1011_s3 }
 0x116   :  { %18 = sbr.rel (!%p16_p5) target bundleno = 3 (0x3), region = 89 }

</bundles_post_ra>
